<compile_context>
chip_gen: v7x
topology: tpu7x:2x2x1
jax: 0.10.0
libtpu: 0.0.40
codegen_flags: <defaults>
</compile_context>

<pallas_src>
import math

import numpy as np
import jax
import jax.numpy as jnp
from jax import lax
from jax.experimental import pallas as pl
from jax.experimental.pallas import tpu as pltpu

# Module hyper-parameters (consistent with the module's __init__).
EMBED_DIM = 32
NUM_HEADS = 4
DOWNSAMPLE = 1
INTERNAL_DIM = EMBED_DIM // DOWNSAMPLE
HEAD_DIM = INTERNAL_DIM // NUM_HEADS
assert INTERNAL_DIM % NUM_HEADS == 0

# dot_general dims: contract over the row (token) dim of both operands,
# i.e. k^T @ v without materializing a transpose.
_TN_DIMS = (((0,), (0,)), ((), ()))

# Packed-parameter row layout.  Every block starts at a multiple-of-8 row so
# all in-kernel slices are sublane-aligned.  (Packing relies on
# EMBED_DIM == INTERNAL_DIM, which holds for downsample_rate == 1.)
_WQ_OFF = 0
_WK_OFF = _WQ_OFF + EMBED_DIM          # 32
_WV_OFF = _WK_OFF + EMBED_DIM          # 64
_WO_OFF = _WV_OFF + EMBED_DIM          # 96
_MASK_OFF = _WO_OFF + INTERNAL_DIM     # 128
_BQ_OFF = _MASK_OFF + INTERNAL_DIM     # 160
_BK_OFF = _BQ_OFF + 8                  # 168
_BV_OFF = _BK_OFF + 8                  # 176
_BO_OFF = _BV_OFF + 8                  # 184
_P_ROWS = _BO_OFF + 8                  # 192


def pack_params(params):
    """One-time packing of the 8 Linear parameters into one (192, 32) buffer.

    Folds the 1/sqrt(head_dim) attention scale into wq/bq and bakes the
    block-diagonal head mask in as a compile-time constant block.
    """
    wq, bq, wk, bk, wv, bv, wo, bo = params
    scale = 1.0 / math.sqrt(HEAD_DIM)

    row = np.arange(INTERNAL_DIM)[:, None] // HEAD_DIM
    col = np.arange(INTERNAL_DIM)[None, :] // HEAD_DIM
    head_mask = (row == col).astype(np.float32)

    p = jnp.zeros((_P_ROWS, INTERNAL_DIM), jnp.float32)
    p = p.at[_WQ_OFF:_WQ_OFF + EMBED_DIM, :].set(wq * scale)
    p = p.at[_WK_OFF:_WK_OFF + EMBED_DIM, :].set(wk)
    p = p.at[_WV_OFF:_WV_OFF + EMBED_DIM, :].set(wv)
    p = p.at[_WO_OFF:_WO_OFF + INTERNAL_DIM, :].set(wo)
    p = p.at[_MASK_OFF:_MASK_OFF + INTERNAL_DIM, :].set(jnp.asarray(head_mask))
    p = p.at[_BQ_OFF:_BQ_OFF + 1, :].set(bq * scale)
    p = p.at[_BK_OFF:_BK_OFF + 1, :].set(bk)
    p = p.at[_BV_OFF:_BV_OFF + 1, :].set(bv)
    p = p.at[_BO_OFF:_BO_OFF + 1, :].set(bo)
    return p


def _make_attention_kernel(B, Nq, Nk):
    q_rows = B * Nq
    kv_rows = B * Nk

    def attention_kernel(x_ref, p_ref, out_ref, merged_ref):
        # Parameter slices (all static, sublane-aligned; no relayout).
        wq = p_ref[_WQ_OFF:_WQ_OFF + EMBED_DIM, :]
        wk = p_ref[_WK_OFF:_WK_OFF + EMBED_DIM, :]
        wv = p_ref[_WV_OFF:_WV_OFF + EMBED_DIM, :]
        wo = p_ref[_WO_OFF:_WO_OFF + INTERNAL_DIM, :]
        head_mask = p_ref[_MASK_OFF:_MASK_OFF + INTERNAL_DIM, :]
        bq = p_ref[_BQ_OFF:_BQ_OFF + 1, :]
        bk = p_ref[_BK_OFF:_BK_OFF + 1, :]
        bv = p_ref[_BV_OFF:_BV_OFF + 1, :]
        bo = p_ref[_BO_OFF:_BO_OFF + 1, :]

        # Packed activations: q rows, then k rows, then v rows.
        q2 = x_ref[0:q_rows, :]
        k2 = x_ref[q_rows:q_rows + kv_rows, :]
        v2 = x_ref[q_rows + kv_rows:q_rows + 2 * kv_rows, :]

        # Input projections over all batch rows at once (MXU, f32).
        # 1/sqrt(head_dim) is already folded into wq/bq.
        qp = jnp.dot(q2, wq, preferred_element_type=jnp.float32) + bq
        kp = jnp.dot(k2, wk, preferred_element_type=jnp.float32) + bk
        vp = jnp.dot(v2, wv, preferred_element_type=jnp.float32) + bv

        # Per batch: merged_b = qp_b @ mask(kp_b^T @ vp_b), written straight
        # into the VMEM scratch (no jnp.concatenate copy).  The block-diagonal
        # head mask makes this exactly concat_h[(q_h k_h^T / sqrt(hd)) v_h]
        # since the reference applies no softmax.  B is tiny -> static unroll.
        for b in range(B):
            qb = qp[b * Nq:(b + 1) * Nq, :]
            kb = kp[b * Nk:(b + 1) * Nk, :]
            vb = vp[b * Nk:(b + 1) * Nk, :]
            t = lax.dot_general(kb, vb, _TN_DIMS,
                                preferred_element_type=jnp.float32)   # (C, C)
            merged_ref[b * Nq:(b + 1) * Nq, :] = jnp.dot(
                qb, t * head_mask, preferred_element_type=jnp.float32)

        # Output projection over all rows, single store.
        out = jnp.dot(merged_ref[...], wo,
                      preferred_element_type=jnp.float32) + bo
        out_ref[...] = out.astype(out_ref.dtype)

    return attention_kernel


def attention_pallas(q, k, v, p_pack):
    B, Nq, E = q.shape
    _, Nk, _ = k.shape
    assert E == EMBED_DIM

    # One activation buffer: q/k/v rows concatenated.  Each block is a
    # multiple of 8 rows here, so in-kernel slices stay sublane-aligned.
    x_pack = jnp.concatenate(
        [q.reshape(B * Nq, E), k.reshape(B * Nk, E), v.reshape(B * Nk, E)],
        axis=0)

    vmem = pl.BlockSpec(memory_space=pltpu.MemorySpace.VMEM)
    out2 = pl.pallas_call(
        _make_attention_kernel(B, Nq, Nk),
        out_shape=jax.ShapeDtypeStruct((B * Nq, E), q.dtype),
        # Gridless: one invocation, fully VMEM resident
        # (2 input DMAs, 1 output store, no pipeline overhead).
        in_specs=[vmem, vmem],
        out_specs=vmem,
        scratch_shapes=[pltpu.VMEM((B * Nq, INTERNAL_DIM), jnp.float32)],
    )(x_pack, p_pack)
    return out2.reshape(B, Nq, E)


def attention_reference(q, k, v, params):
    """Pure-JAX reference mirroring the PyTorch forward exactly."""
    wq, bq, wk, bk, wv, bv, wo, bo = params
    qp = q @ wq + bq
    kp = k @ wk + bk
    vp = v @ wv + bv

    def separate_heads(x):
        b, n, c = x.shape
        return x.reshape(b, n, NUM_HEADS, c // NUM_HEADS).transpose(0, 2, 1, 3)

    qh, kh, vh = separate_heads(qp), separate_heads(kp), separate_heads(vp)
    attn = jnp.einsum("bhqd,bhkd->bhqk", qh, kh) / math.sqrt(HEAD_DIM)
    out = jnp.einsum("bhqk,bhkd->bhqd", attn, vh)
    b, h, n, d = out.shape
    out = out.transpose(0, 2, 1, 3).reshape(b, n, h * d)
    return out @ wo + bo


def init_linear(key, fan_in, fan_out):
    """Deterministic synthetic init (PyTorch-Linear-style uniform bounds)."""
    kw, kb = jax.random.split(key)
    bound = 1.0 / math.sqrt(fan_in)
    w = jax.random.uniform(kw, (fan_in, fan_out), jnp.float32, -bound, bound)
    b = jax.random.uniform(kb, (1, fan_out), jnp.float32, -bound, bound)
    return w, b


if __name__ == "__main__":
    key = jax.random.PRNGKey(0)
    B, Nq, Nk = 2, 8, 8

    k_q, k_k, k_v, k_pq, k_pk, k_pv, k_po = jax.random.split(key, 7)
    q = jax.random.normal(k_q, (B, Nq, EMBED_DIM), jnp.float32)
    k = jax.random.normal(k_k, (B, Nk, EMBED_DIM), jnp.float32)
    v = jax.random.normal(k_v, (B, Nk, EMBED_DIM), jnp.float32)

    wq, bq = init_linear(k_pq, EMBED_DIM, INTERNAL_DIM)
    wk, bk = init_linear(k_pk, EMBED_DIM, INTERNAL_DIM)
    wv, bv = init_linear(k_pv, EMBED_DIM, INTERNAL_DIM)
    wo, bo = init_linear(k_po, INTERNAL_DIM, EMBED_DIM)
    params = (wq, bq, wk, bk, wv, bv, wo, bo)

    # One-time parameter packing (scale fold + head mask baked in).
    p_pack = pack_params(params)

    out = attention_pallas(q, k, v, p_pack)
    out = jax.block_until_ready(out)

    ref = attention_reference(q, k, v, params)
    assert out.shape == (B, Nq, EMBED_DIM)
    assert jnp.allclose(out, ref, rtol=1e-4, atol=1e-4), "mismatch vs reference"

    print("KERNEL_OK")
</pallas_src>

<mosaic_0001>
module attributes {stable_mosaic.version = 11 : i64} {
  func.func @attention_kernel(%arg0: memref<48x32xf32, #tpu.memory_space<vmem>>, %arg1: memref<192x32xf32, #tpu.memory_space<vmem>>, %arg2: memref<16x32xf32, #tpu.memory_space<vmem>>, %arg3: memref<16x32xf32, #tpu.memory_space<vmem>>) attributes {dimension_semantics = [], scalar_prefetch = 0 : i64, scratch_operands = 1 : i64, tpu.core_type = #tpu.core_type<tc>} {
    %c0 = arith.constant 0 : index
    %c0_0 = arith.constant 0 : index
    %0 = vector.load %arg1[%c0, %c0_0] : memref<192x32xf32, #tpu.memory_space<vmem>>, vector<32x32xf32>
    %c32 = arith.constant 32 : index
    %c0_1 = arith.constant 0 : index
    %1 = vector.load %arg1[%c32, %c0_1] : memref<192x32xf32, #tpu.memory_space<vmem>>, vector<32x32xf32>
    %c64 = arith.constant 64 : index
    %c0_2 = arith.constant 0 : index
    %2 = vector.load %arg1[%c64, %c0_2] : memref<192x32xf32, #tpu.memory_space<vmem>>, vector<32x32xf32>
    %c96 = arith.constant 96 : index
    %c0_3 = arith.constant 0 : index
    %3 = vector.load %arg1[%c96, %c0_3] : memref<192x32xf32, #tpu.memory_space<vmem>>, vector<32x32xf32>
    %c128 = arith.constant 128 : index
    %c0_4 = arith.constant 0 : index
    %4 = vector.load %arg1[%c128, %c0_4] : memref<192x32xf32, #tpu.memory_space<vmem>>, vector<32x32xf32>
    %c160 = arith.constant 160 : index
    %c0_5 = arith.constant 0 : index
    %5 = vector.load %arg1[%c160, %c0_5] : memref<192x32xf32, #tpu.memory_space<vmem>>, vector<1x32xf32>
    %c168 = arith.constant 168 : index
    %c0_6 = arith.constant 0 : index
    %6 = vector.load %arg1[%c168, %c0_6] : memref<192x32xf32, #tpu.memory_space<vmem>>, vector<1x32xf32>
    %c176 = arith.constant 176 : index
    %c0_7 = arith.constant 0 : index
    %7 = vector.load %arg1[%c176, %c0_7] : memref<192x32xf32, #tpu.memory_space<vmem>>, vector<1x32xf32>
    %c184 = arith.constant 184 : index
    %c0_8 = arith.constant 0 : index
    %8 = vector.load %arg1[%c184, %c0_8] : memref<192x32xf32, #tpu.memory_space<vmem>>, vector<1x32xf32>
    %c0_9 = arith.constant 0 : index
    %c0_10 = arith.constant 0 : index
    %9 = vector.load %arg0[%c0_9, %c0_10] : memref<48x32xf32, #tpu.memory_space<vmem>>, vector<16x32xf32>
    %c16 = arith.constant 16 : index
    %c0_11 = arith.constant 0 : index
    %10 = vector.load %arg0[%c16, %c0_11] : memref<48x32xf32, #tpu.memory_space<vmem>>, vector<16x32xf32>
    %c32_12 = arith.constant 32 : index
    %c0_13 = arith.constant 0 : index
    %11 = vector.load %arg0[%c32_12, %c0_13] : memref<48x32xf32, #tpu.memory_space<vmem>>, vector<16x32xf32>
    %cst = arith.constant dense<0.000000e+00> : vector<16x32xf32>
    %12 = tpu.matmul %9, %0, %cst {dimension_numbers = #tpu.dot_dimension_numbers<[1], [0], [0], [1], [0, 0, 1, 1], [], []>} : vector<16x32xf32>, vector<32x32xf32>, vector<16x32xf32> -> vector<16x32xf32>
    %13 = vector.broadcast %5 : vector<1x32xf32> to vector<16x32xf32>
    %14 = arith.addf %12, %13 : vector<16x32xf32>
    %cst_14 = arith.constant dense<0.000000e+00> : vector<16x32xf32>
    %15 = tpu.matmul %10, %1, %cst_14 {dimension_numbers = #tpu.dot_dimension_numbers<[1], [0], [0], [1], [0, 0, 1, 1], [], []>} : vector<16x32xf32>, vector<32x32xf32>, vector<16x32xf32> -> vector<16x32xf32>
    %16 = vector.broadcast %6 : vector<1x32xf32> to vector<16x32xf32>
    %17 = arith.addf %15, %16 : vector<16x32xf32>
    %cst_15 = arith.constant dense<0.000000e+00> : vector<16x32xf32>
    %18 = tpu.matmul %11, %2, %cst_15 {dimension_numbers = #tpu.dot_dimension_numbers<[1], [0], [0], [1], [0, 0, 1, 1], [], []>} : vector<16x32xf32>, vector<32x32xf32>, vector<16x32xf32> -> vector<16x32xf32>
    %19 = vector.broadcast %7 : vector<1x32xf32> to vector<16x32xf32>
    %20 = arith.addf %18, %19 : vector<16x32xf32>
    %21 = vector.extract_strided_slice %14 {offsets = [0, 0], sizes = [8, 32], strides = [1, 1]} : vector<16x32xf32> to vector<8x32xf32>
    %22 = vector.extract_strided_slice %17 {offsets = [0, 0], sizes = [8, 32], strides = [1, 1]} : vector<16x32xf32> to vector<8x32xf32>
    %23 = vector.extract_strided_slice %20 {offsets = [0, 0], sizes = [8, 32], strides = [1, 1]} : vector<16x32xf32> to vector<8x32xf32>
    %cst_16 = arith.constant dense<0.000000e+00> : vector<32x32xf32>
    %24 = tpu.matmul %22, %23, %cst_16 {dimension_numbers = #tpu.dot_dimension_numbers<[0], [0], [1], [1], [0, 1, 1, 1], [], []>} : vector<8x32xf32>, vector<8x32xf32>, vector<32x32xf32> -> vector<32x32xf32>
    %25 = arith.mulf %24, %4 : vector<32x32xf32>
    %cst_17 = arith.constant dense<0.000000e+00> : vector<8x32xf32>
    %26 = tpu.matmul %21, %25, %cst_17 {dimension_numbers = #tpu.dot_dimension_numbers<[1], [0], [0], [1], [0, 0, 1, 1], [], []>} : vector<8x32xf32>, vector<32x32xf32>, vector<8x32xf32> -> vector<8x32xf32>
    %c0_18 = arith.constant 0 : index
    %c0_19 = arith.constant 0 : index
    %27 = vector.load %arg3[%c0_18, %c0_19] : memref<16x32xf32, #tpu.memory_space<vmem>>, vector<8x32xf32>
    tpu.vector_store %arg3[%c0_18, %c0_19], %26 {strides = array<i32>} : memref<16x32xf32, #tpu.memory_space<vmem>>, vector<8x32xf32>,
    %28 = vector.extract_strided_slice %14 {offsets = [8, 0], sizes = [8, 32], strides = [1, 1]} : vector<16x32xf32> to vector<8x32xf32>
    %29 = vector.extract_strided_slice %17 {offsets = [8, 0], sizes = [8, 32], strides = [1, 1]} : vector<16x32xf32> to vector<8x32xf32>
    %30 = vector.extract_strided_slice %20 {offsets = [8, 0], sizes = [8, 32], strides = [1, 1]} : vector<16x32xf32> to vector<8x32xf32>
    %cst_20 = arith.constant dense<0.000000e+00> : vector<32x32xf32>
    %31 = tpu.matmul %29, %30, %cst_20 {dimension_numbers = #tpu.dot_dimension_numbers<[0], [0], [1], [1], [0, 1, 1, 1], [], []>} : vector<8x32xf32>, vector<8x32xf32>, vector<32x32xf32> -> vector<32x32xf32>
    %32 = arith.mulf %31, %4 : vector<32x32xf32>
    %cst_21 = arith.constant dense<0.000000e+00> : vector<8x32xf32>
    %33 = tpu.matmul %28, %32, %cst_21 {dimension_numbers = #tpu.dot_dimension_numbers<[1], [0], [0], [1], [0, 0, 1, 1], [], []>} : vector<8x32xf32>, vector<32x32xf32>, vector<8x32xf32> -> vector<8x32xf32>
    %c8 = arith.constant 8 : index
    %c0_22 = arith.constant 0 : index
    %34 = vector.load %arg3[%c8, %c0_22] : memref<16x32xf32, #tpu.memory_space<vmem>>, vector<8x32xf32>
    tpu.vector_store %arg3[%c8, %c0_22], %33 {strides = array<i32>} : memref<16x32xf32, #tpu.memory_space<vmem>>, vector<8x32xf32>,
    %c0_23 = arith.constant 0 : index
    %c0_24 = arith.constant 0 : index
    %35 = vector.load %arg3[%c0_23, %c0_24] : memref<16x32xf32, #tpu.memory_space<vmem>>, vector<16x32xf32>
    %cst_25 = arith.constant dense<0.000000e+00> : vector<16x32xf32>
    %36 = tpu.matmul %35, %3, %cst_25 {dimension_numbers = #tpu.dot_dimension_numbers<[1], [0], [0], [1], [0, 0, 1, 1], [], []>} : vector<16x32xf32>, vector<32x32xf32>, vector<16x32xf32> -> vector<16x32xf32>
    %37 = vector.broadcast %8 : vector<1x32xf32> to vector<16x32xf32>
    %38 = arith.addf %36, %37 : vector<16x32xf32>
    %c0_26 = arith.constant 0 : index
    %c0_27 = arith.constant 0 : index
    %39 = vector.load %arg2[%c0_26, %c0_27] : memref<16x32xf32, #tpu.memory_space<vmem>>, vector<16x32xf32>
    tpu.vector_store %arg2[%c0_26, %c0_27], %38 {strides = array<i32>} : memref<16x32xf32, #tpu.memory_space<vmem>>, vector<16x32xf32>,
    return
  }
}

</mosaic_0001>

<bundles_post_ra>
// kernel: tpu_custom_call.1
= control target key start
LH: loop header
LB: loop body
LE: loop exit
PB: predicated region body
PF: predicated region fallthrough
CT: control target
= control target key end

     0   :  { %vm46_vm0 = vcmask 261120   ;;  %s1188_s0 = inlined_call_operand.vmem [shape: f32[48,32], index: 0, kind: input, shape index: {}]   ;;  %s1189_s1 = inlined_call_operand.vmem [shape: f32[192,32], index: 1, kind: input, shape index: {}]   ;;  %s1190_s2 = inlined_call_operand.hbm [shape: f32[16,32], index: 2, kind: output, shape index: {}]  }
   0x1   :  { %v16_v0 = vld [vmem:[%s1189_s1 + $0x20] sm:$0xff]  ;;  %v17_v1 = vld [vmem:[%s1189_s1 + $0x28] sm:$0xff]  ;;  %v18_v2 = vld [vmem:[%s1189_s1 + $0x30] sm:$0xff] }
   0x2   :  { %v974_v3 = vpack.c.bf16 %v17_v1, %v16_v0  ;;  %v19_v4 = vld [vmem:[%s1189_s1 + $0x38] sm:$0xff]  ;;  %v38_v5 = vld [vmem:[%s1188_s0 + $0x10] sm:$0xff]  ;;  %v12_v7 = vld [vmem:[%s1189_s1] sm:$0xff] }
   0x3   :  { %v978_v6 = vpack.c.bf16 %v19_v4, %v18_v2  ;;  %903 = vmatprep.mubr.msk.f32.mxu1 %vm46_vm0, %v38_v5  ;;  %v13_v8 = vld [vmem:[%s1189_s1 + $0x8] sm:$0xff]  ;;  %v14_v9 = vld [vmem:[%s1189_s1 + $0x10] sm:$0xff]  ;;  %v15_v11 = vld [vmem:[%s1189_s1 + $0x18] sm:$0xff] }
   0x4   :  { %975 = vmatprep.subr.bf16.mxu1 %v974_v3  ;;  %v966_v10 = vpack.c.bf16 %v13_v8, %v12_v7  ;;  %v36_v12 = vld [vmem:[%s1188_s0] sm:$0xff]  ;;  %v970_v13 = vpack.c.bf16 %v15_v11, %v14_v9  ;;  %v21_v15 = vld [vmem:[%s1189_s1 + $0x48] sm:$0xff] }
   0x5   :  { %977 = vmatpush3.bf16.msra.mxu1 %v974_v3  ;;  %892 = vmatprep.mubr.msk.f32.mxu0 %vm46_vm0, %v36_v12  ;;  %v20_v14 = vld [vmem:[%s1189_s1 + $0x40] sm:$0xff] }
   0x6   :  { %979 = vmatprep.subr.bf16.mxu1 %v978_v6  ;;  %967 = vmatprep.subr.bf16.mxu0 %v966_v10 }
   0x7   :  { %969 = vmatpush3.bf16.msra.mxu0 %v966_v10 }
   0x8   :  { %7 = vsyncpa [#allocation4], 0  ;;  %971 = vmatprep.subr.bf16.mxu0 %v970_v13  ;;  %v982_v16 = vpack.c.bf16 %v21_v15, %v20_v14  ;;  %v39_v17 = vld [vmem:[%s1188_s0 + $0x18] sm:$0xff]  ;;  %v22_v18 = vld [vmem:[%s1189_s1 + $0x50] sm:$0xff]  ;;  %vm330_vm1 = vcmask 64512   ;;  %v1040_v44 = vmov 0.0|0.0  }
   0x9   :  { %981 = vmatpush3.bf16.msra.mxu1 %v978_v6  ;;  %v23_v19 = vld [vmem:[%s1189_s1 + $0x58] sm:$0xff]  ;;  %v37_v20 = vld [vmem:[%s1188_s0 + $0x8] sm:$0xff]  ;;  %v40_v22 = vld [vmem:[%s1188_s0 + $0x20] sm:$0xff]  ;;  %vm1041_vm2 = vmmov 0   ;;  %v1042_v45 = vmov 0.0   ;;  %s1043_s12 = smov [#allocation3]  }
   0xa   :  { %v986_v21 = vpack.c.bf16 %v23_v19, %v22_v18  ;;  %v41_v23 = vld [vmem:[%s1188_s0 + $0x28] sm:$0xff]  ;;  %v824_v30 = vld [vmem:[%s1189_s1 + $0xb0] ss:$0 sm:$0xff]  ;;  %v28_v47 = vld [vmem:[%s1189_s1 + $0x80] sm:$0xff]  ;;  %s807_s13 = sshll.u32 %s1043_s12, 4  ;;  %s808_s13 = int_to_ptr.vmem [resolvable:$true] %s807_s13 }
   0xb   :  { %973 = vmatpush3.bf16.msra.mxu0 %v970_v13  ;;  %v821_v24 = vld [vmem:[%s1189_s1 + $0xa8] ss:$0 sm:$0xff]  ;;  %v31_v53 = vld [vmem:[%s1189_s1 + $0x98] sm:$0xff]  ;;  %v30_v54 = vld [vmem:[%s1189_s1 + $0x90] sm:$0xff]  ;;  %s1016_s14 = scalar_lea.vmem %s808_s13, 256  ;;  %p1021_p1 = scmp.lt.s32.totalorder %s808_s13, %s808_s13 }
   0xc   :  { %904 = vmatmul.mubr.msk.f32.vlgmr.msra.gmra.mrb[0].mxu1 %vm46_vm0, %v39_v17  ;;  %983 = vmatprep.subr.bf16.mxu0 %v982_v16  ;;  %v29_v46 = vld [vmem:[%s1189_s1 + $0x88] sm:$0xff]  ;;  %v818_v59 = vld [vmem:[%s1189_s1 + $0xa0] ss:$0 sm:$0xff]  ;;  %v26_v12 = vld [vmem:[%s1189_s1 + $0x70] sm:$0xff]  ;;  %p1017_p0 = scmp.ne.s32.totalorder %s808_s13, %s1016_s14  ;;  %p1022_p2 = scmp.lt.s32.totalorder %s1016_s14, %s1016_s14 }
   0xd   :  { %v24_v9 = vld [vmem:[%s1189_s1 + $0x60] sm:$0xff]  ;;  %v25_v10 = vld [vmem:[%s1189_s1 + $0x68] sm:$0xff]  ;;  %v27_v13 = vld [vmem:[%s1189_s1 + $0x78] sm:$0xff] }
   0xe   :  { %893 = vmatmul.mubr.msk.f32.vlgmr.msra.gmra.mrb[0].mxu0 %vm46_vm0, %v37_v20  ;;  %v1002_v11 = vpack.c.bf16 %v25_v10, %v24_v9  ;;  %v1006_v14 = vpack.c.bf16 %v27_v13, %v26_v12  ;;  %p1023_p3 = por %p1022_p2, %p1021_p1 }
   0xf   :  { %985 = vmatpush3.bf16.msra.mxu0 %v982_v16  ;;  %914 = vmatprep.mubr.msk.f32.mxu0 %vm46_vm0, %v40_v22 }
  0x10   :  { %987 = vmatprep.subr.bf16.mxu0 %v986_v21  ;;  %p1024_p4 = pnand %p1023_p3, %p1017_p0 }
  0x13   :  { %989 = vmatpush3.bf16.msra.mxu0 %v986_v21  ;;  %v837_v21 = vld [vmem:[%s1189_s1 + $0xb8] ss:$0 sm:$0xff] }
  0x16   :  { %915 = vmatmul.mubr.msk.f32.vlgmr.msra.gmra.mrb[2].mxu0 %vm46_vm0, %v41_v23 }
  0xdf   :  { %v905_v25 = vpop.f32.mrb[0].mxu1 }
  0xe0   :  { %v204_v26 = vpop.f32.mrb[1].mxu1  ;;  %v210_v35 = vadd.f32 %v905_v25, %v821_v24 }
  0xe1   :  { %v205_v27 = vadd.f32 %v821_v24, %v204_v26  ;;  %v1124_v28 = vpop.f32.mrb[0].mxu0 }
  0xe2   :  { %v119_v29 = vpop.f32.mrb[1].mxu0  ;;  %v125_v8 = vadd.f32 %v1124_v28, %v818_v59 }
  0xe3   :  { %298 = vxpose.xlu0.b32.start.end [1/1] (short) (narrow) %v205_v27, 32  ;;  %v120_v61 = vadd.f32 %v818_v59, %v119_v29 }
  0xe9   :  { %v916_v31 = vpop.f32.mrb[2].mxu0 }
  0xea   :  { %v295_v32 = vadd.f32 %v916_v31, %v824_v30  ;;  %v289_v33 = vpop.f32.mrb[3].mxu0 }
  0xeb   :  { %v290_v34 = vadd.f32 %v824_v30, %v289_v33 }
  0xec   :  { %936 = vmatprep.subr.mxu0 %v295_v32 }
  0xed   :  { %917 = vmatprep.subr.mxu1 %v290_v34  ;;  %937 = vmatpush3.msra.mxu0 %v295_v32 }
  0xee   :  { %918 = vmatpush3.msra.mxu1 %v290_v34  ;;  %996 = vmatprep.subr.bf16.mxu0 %v1040_v44 }
  0xef   :  { %990 = vmatprep.subr.bf16.mxu1 %v1040_v44 }
  0xf0   :  { %506 = vxpose.xlu0.b32.start.end [1/1] (short) (narrow) %v210_v35, 32 }
 0x163   :  { %v314_v36 = vpop.trf.xlu0 }
 0x164   :  { %919 = vmatprep.mubr.msk.f32.mxu1 %vm330_vm1, %v314_v36 }
 0x167   :  { %v315_v37 = vpop.trf.xlu0 }
 0x168   :  { %920 = vmatmul.mubr.msk.f32.vlgmr.msra.gmra.mrb[2].mxu1 %vm330_vm1, %v315_v37 }
 0x16b   :  { %v316_v38 = vpop.trf.xlu0 }
 0x16c   :  { %922 = vmatprep.mubr.msk.f32.mxu1 %vm330_vm1, %v316_v38 }
 0x16f   :  { %v317_v39 = vpop.trf.xlu0 }
 0x170   :  { %923 = vmatmul.mubr.msk.f32.gmra.mrb[4].mxu1 %vm330_vm1, %v317_v39 }
 0x171   :  { %933 = vmatprep.mubr.msk.f32.mxu1 %vm1041_vm2, %v1042_v45 }
 0x173   :  { %v522_v40 = vpop.trf.xlu0 }
 0x174   :  { %938 = vmatprep.mubr.msk.f32.mxu0 %vm330_vm1, %v522_v40 }
 0x177   :  { %v523_v41 = vpop.trf.xlu0 }
 0x178   :  { %939 = vmatmul.mubr.msk.f32.vlgmr.msra.gmra.mrb[4].mxu0 %vm330_vm1, %v523_v41 }
 0x17b   :  { %v524_v42 = vpop.trf.xlu0 }
 0x17c   :  { %941 = vmatprep.mubr.msk.f32.mxu0 %vm330_vm1, %v524_v42 }
 0x17f   :  { %v525_v43 = vpop.trf.xlu0 }
 0x180   :  { %942 = vmatmul.mubr.msk.f32.gmra.mrb[6].mxu0 %vm330_vm1, %v525_v43 }
 0x181   :  { %952 = vmatprep.mubr.msk.f32.mxu0 %vm1041_vm2, %v1042_v45 }
 0x23b   :  { %v921_v48 = vpop.f32.mrb[2].mxu1 }
 0x23c   :  { %v429_v49 = vmul.f32 %v921_v48, %v29_v46  ;;  %v409_v50 = vpop.f32.mrb[3].mxu1 }
 0x23d   :  { %v428_v51 = vmul.f32 %v409_v50, %v28_v47 }
 0x23f   :  { %v991_v52 = vpack.c.bf16 %v429_v49, %v428_v51 }
 0x241   :  { %992 = vmatpush3.bf16.msra.mxu1 %v991_v52 }
 0x242   :  { %993 = vmatprep.subr.bf16.mxu1 %v1040_v44 }
 0x243   :  { %v924_v55 = vpop.f32.mrb[4].mxu1 }
 0x244   :  { %v431_v56 = vmul.f32 %v924_v55, %v31_v53  ;;  %v419_v57 = vpop.f32.mrb[5].mxu1 }
 0x245   :  { %v430_v58 = vmul.f32 %v419_v57, %v30_v54 }
 0x247   :  { %v994_v60 = vpack.c.bf16 %v431_v56, %v430_v58 }
 0x249   :  { %995 = vmatpush3.bf16.msra.mxu1 %v994_v60 }
 0x24a   :  { %1003 = vmatprep.subr.bf16.mxu1 %v1002_v11 }
 0x24b   :  { %v940_v62 = vpop.f32.mrb[4].mxu0 }
 0x24c   :  { %v636_v63 = vmul.f32 %v940_v62, %v29_v46  ;;  %934 = vmatmul.mubr.msk.f32.vlgmr.msra.gmra.mrb[6].mxu1 %vm46_vm0, %v120_v61  ;;  %v616_v0 = vpop.f32.mrb[5].mxu0 }
 0x24d   :  { %v635_v1 = vmul.f32 %v616_v0, %v28_v47  ;;  %1005 = vmatpush3.bf16.msra.mxu1 %v1002_v11 }
 0x24e   :  { %1007 = vmatprep.subr.bf16.mxu1 %v1006_v14 }
 0x24f   :  { %v997_v2 = vpack.c.bf16 %v636_v63, %v635_v1 }
 0x251   :  { %998 = vmatpush3.bf16.msra.mxu0 %v997_v2  ;;  %1009 = vmatpush3.bf16.msra.mxu1 %v1006_v14 }
 0x252   :  { %999 = vmatprep.subr.bf16.mxu0 %v1040_v44 }
 0x253   :  { %v943_v3 = vpop.f32.mrb[6].mxu0 }
 0x254   :  { %v638_v4 = vmul.f32 %v943_v3, %v31_v53  ;;  %v626_v5 = vpop.f32.mrb[7].mxu0 }
 0x255   :  { %v637_v6 = vmul.f32 %v626_v5, %v30_v54 }
 0x257   :  { %v1000_v7 = vpack.c.bf16 %v638_v4, %v637_v6 }
 0x259   :  { %1001 = vmatpush3.bf16.msra.mxu0 %v1000_v7 }
 0x25c   :  { %953 = vmatmul.mubr.msk.f32.vlgmr.msra.gmra.mrb[8].mxu0 %vm46_vm0, %v125_v8 }
 0x31f   :  { %v501_v15 = vpop.f32.mrb[6].mxu1 }
 0x320   :  { %505 = vst.msk [vmem:[#allocation2] sm:$0xff] %vm46_vm0, %v501_v15  ;;  %v935_v16 = vpop.f32.mrb[7].mxu1 }
 0x327   :  { %v713_v17 = vld [vmem:[#allocation2] sm:$0xff] }
 0x328   :  { %963 = vmatprep.mubr.msk.f32.mxu1 %vm46_vm0, %v713_v17 }
 0x32f   :  { %v708_v18 = vpop.f32.mrb[8].mxu0 }
 0x330   :  { %712 = vst.msk [vmem:[#allocation2 + $0x8] sm:$0xff] %vm46_vm0, %v708_v18  ;;  %v954_v19 = vpop.f32.mrb[9].mxu0 }
 0x337   :  { %v714_v20 = vld [vmem:[#allocation2 + $0x8] sm:$0xff] }
 0x338   :  { %964 = vmatmul.mubr.msk.f32.vlgmr.msra.gmra.mrb[8].mxu1 %vm46_vm0, %v714_v20 }
 0x40b   :  { %v965_v22 = vpop.f32.mrb[8].mxu1 }
 0x40c   :  { %v797_v23 = vadd.f32 %v965_v22, %v837_v21  ;;  %v791_v24 = vpop.f32.mrb[9].mxu1 }
 0x40d   :  { %v792_v25 = vadd.f32 %v837_v21, %v791_v24 }
 0x40e   :  { %801 = vst.msk [vmem:[#allocation3 + $0x8] sm:$0xff] %vm46_vm0, %v797_v23 }
 0x40f   :  { %800 = vst.msk [vmem:[#allocation3] sm:$0xff] %vm46_vm0, %v792_v25 }
 0x410   :  { %1027 = shalt.err (!%p1024_p4)
}
 0x411   :  { %s1028_s16 = scalar_lea.hbm %s1190_s2, 256 }
 0x412   :  { %p1029_p5 = scmp.ne.s32.totalorder %s1190_s2, %s1028_s16  ;;  %p1032_p6 = scmp.lt.u32.totalorder %s1028_s16, %s1190_s2 }
 0x414   :  { %p1034_p7 = pnand %p1032_p6, %p1029_p5 }
 0x416   :  { %1037 = shalt.err (!%p1034_p7)
}
 0x417   :  { %s1044_s0 = smov 128   ;;  %s1045_s21 = smov 8  }
 0x418   :  { %813 = dma.vmem_to_hbm [thread:$0]  %s808_s13, 256, %s1190_s2, [#allocation4], %s1044_s0, %s1044_s0, %s1045_s21  }
 0x419   :  { %1038 = dma.done.wait [#allocation4], 256  }
 0x41a   :  { %1039 = vsyncadd [#allocation4], 4294967040 }
 0x41b   :  { %817 = vsyncpa [#allocation4], 1 }

</bundles_post_ra>
